<compile_context>
chip_gen: v5e
topology: v5e:2x2
jax: 0.10.0
libtpu: 0.0.40
codegen_flags: <defaults>
</compile_context>

<pallas_src>
import jax
import jax.numpy as jnp
import numpy as np
from jax.experimental import pallas as pl
from jax.experimental.pallas import tpu as pltpu

HIDDEN = 32          # hidden_channels (per-head output width F)
HEADS = 4            # num_heads
N_NODES = 16
N_EDGES = 48
N_SRC = 128          # src dim padded to a full lane width (lane-dense softmax / matmuls)
NEG_SLOPE = 0.2      # GATConv default LeakyReLU slope
MASK_BIG = 1e30


def _gat_layer(h_dst_bf, adj, adj_bias, att_blk, bias, apply_relu):
    """One GATConv given pre-computed per-head features h = x @ W (heads on lanes).

    h_dst_bf : (N_DST, H*F) bf16   features of the real (dst-padded) nodes
    adj      : (N_DST, N_SRC) f32  0/1 mask, adj[dst, src]
    adj_bias : (N_DST, N_SRC) f32  0 on edges, -MASK_BIG on non-edges
    att_blk  : (H*F, 2H) bf16      per-head att_src / att_dst columns
    bias     : (1, H*F) f32
    returns  : (N_DST, H*F) f32
    """
    n_dst = h_dst_bf.shape[0]
    n_src = adj.shape[1]
    hf = h_dst_bf.shape[1]

    # Pad src features to the full 128-lane src dim with zeros; padded src columns are
    # masked out by adj anyway, and zero rows give zero scores (bounded under the mask).
    h_src = jnp.concatenate(
        [h_dst_bf, jnp.zeros((n_src - n_dst, hf), jnp.bfloat16)], axis=0)     # (128, H*F)

    # Per-node attention terms for every head in a single small MXU matmul:
    #   scores[:, h]     = <h_j, att_src[h]>   (source term, all 128 src rows)
    #   scores[:, H + h] = <h_i, att_dst[h]>   (target term, first N_DST rows used)
    scores = jnp.dot(h_src, att_blk, preferred_element_type=jnp.float32)      # (128, 2H)
    src_t = scores[:, :HEADS].T                                               # (H, 128): tiny transpose
    dst_s = scores[:n_dst, HEADS:]                                            # (N_DST, H)

    head_vals = []
    for hh in range(HEADS):                       # unrolled at trace time (HEADS = 4)
        lo, hi = hh * HIDDEN, (hh + 1) * HIDDEN
        # e[i, j] = att_dst . Wx_i + att_src . Wx_j
        e = dst_s[:, hh:hh + 1] + src_t[hh:hh + 1, :]                         # (N_DST, 128)
        e = jnp.maximum(e, NEG_SLOPE * e)         # LeakyReLU(0.2): single VALU max
        e = e + adj_bias                          # additive mask: non-edges -> ~ -1e30
        m = jnp.max(e, axis=-1, keepdims=True)
        p = jnp.exp(e - m) * adj                  # exact zeros on non-edges / padding
        denom = jnp.sum(p, axis=-1, keepdims=True)
        inv = pl.reciprocal(jnp.maximum(denom, 1e-16), approx=True)           # EUP, not VALU
        # Normalize after aggregation: (N_DST,F)*inv instead of (N_DST,128)*inv.
        agg = jnp.dot(p.astype(jnp.bfloat16), h_src[:, lo:hi],
                      preferred_element_type=jnp.float32)                     # (N_DST, F)
        head_vals.append(agg * inv)

    # Assemble the lane-dense (N_DST, H*F) layer output once (single unmasked store later).
    # TODO(synk): for larger graphs, fuse the 4 per-head matmuls via a block-diagonal RHS
    # so the MXU emits the full 128-lane slab directly.
    out = jnp.concatenate(head_vals, axis=-1) + bias                          # (N_DST, H*F)
    if apply_relu:
        out = jnp.maximum(out, 0.0)
    return out


def gnn_kernel(x_ref, adj_ref,
               w1_ref, att1_ref, b1_ref,
               w2_ref, att2_ref, b2_ref,
               out_ref):
    adj = adj_ref[...]
    adj_bias = (adj - 1.0) * MASK_BIG             # computed once, reused by both layers

    # ---- layer 1: GATConv(C, F, heads=H) + ReLU ----
    h1 = jnp.dot(x_ref[...].astype(jnp.bfloat16), w1_ref[...],
                 preferred_element_type=jnp.float32)                          # (N_DST, H*F)
    y1 = _gat_layer(h1.astype(jnp.bfloat16), adj, adj_bias,
                    att1_ref[...], b1_ref[...], apply_relu=True)

    # F.dropout(p=0.5, training=False) is the identity in eval mode.
    # TODO(synk): training-mode dropout would use pltpu.prng_seed / prng_random_bits.

    # ---- layer 2: GATConv(H*F, F, heads=H), fed directly from registers (no scratch) ----
    h2 = jnp.dot(y1.astype(jnp.bfloat16), w2_ref[...],
                 preferred_element_type=jnp.float32)                          # (N_DST, H*F)
    y2 = _gat_layer(h2.astype(jnp.bfloat16), adj, adj_bias,
                    att2_ref[...], b2_ref[...], apply_relu=False)

    out_ref[...] = y2                              # one dense 128-lane store


def _att_block(att_src, att_dst):
    """(H, F) x 2 -> (H*F, 2H) attention score matrix (layout described above)."""
    h, f = att_src.shape
    blk = jnp.zeros((h * f, 2 * h), jnp.float32)
    for hh in range(h):
        blk = blk.at[hh * f:(hh + 1) * f, hh].set(att_src[hh])
        blk = blk.at[hh * f:(hh + 1) * f, h + hh].set(att_dst[hh])
    return blk


def gnn_forward(x, adj, params):
    (w1, as1, ad1, b1, w2, as2, ad2, b2) = params
    n, c = x.shape
    n_dst = ((n + 7) // 8) * 8                     # dst/sublane dim: round up to 8 only
    x_p = jnp.zeros((n_dst, c), jnp.float32).at[:n, :].set(x)
    adj_p = jnp.zeros((n_dst, N_SRC), jnp.float32).at[:n, :n].set(adj)
    att1 = _att_block(as1, ad1).astype(jnp.bfloat16)
    att2 = _att_block(as2, ad2).astype(jnp.bfloat16)

    vmem = pl.BlockSpec(memory_space=pltpu.MemorySpace.VMEM)
    out = pl.pallas_call(
        gnn_kernel,
        out_shape=jax.ShapeDtypeStruct((n_dst, HEADS * HIDDEN), jnp.float32),
        in_specs=[vmem] * 8,
        out_specs=vmem,
        # TODO(synk): for multi-graph batches or large N, add a ("parallel",) grid axis over
        # dst-row tiles (>=2 tiles only; uses both v7x TensorCores), stream src/K blocks with
        # online softmax, and keep adj in a compact dtype so tiles fit v7x's 64 MiB VMEM.
    )(x_p, adj_p,
      w1.astype(jnp.bfloat16), att1, b1,
      w2.astype(jnp.bfloat16), att2, b2)
    return out[:n]


# ---------------- pure-JAX reference (independent f32 implementation) ----------------

def _gat_layer_ref(x, adj, w, att_src, att_dst, bias):
    """PyG GATConv semantics on a dense adjacency: softmax over incoming edges,
    add_self_loops=False, concat heads; zero-in-degree nodes produce bias only."""
    n = x.shape[0]
    h = (x @ w).reshape(n, HEADS, HIDDEN)                       # (N, H, F)
    a_s = jnp.einsum('nhf,hf->nh', h, att_src)                  # source term
    a_d = jnp.einsum('nhf,hf->nh', h, att_dst)                  # target term
    e = a_d[:, None, :] + a_s[None, :, :]                       # (dst, src, H)
    e = jnp.where(e > 0, e, NEG_SLOPE * e)
    e = jnp.where(adj[:, :, None] > 0, e, -MASK_BIG)
    e = e - jnp.max(e, axis=1, keepdims=True)
    p = jnp.exp(e) * adj[:, :, None]
    alpha = p / jnp.maximum(jnp.sum(p, axis=1, keepdims=True), 1e-16)
    out = jnp.einsum('ijh,jhf->ihf', alpha, h).reshape(n, HEADS * HIDDEN)
    return out + bias


def gnn_reference(x, adj, params):
    (w1, as1, ad1, b1, w2, as2, ad2, b2) = params
    h1 = jnp.maximum(_gat_layer_ref(x, adj, w1, as1, ad1, b1), 0.0)
    return _gat_layer_ref(h1, adj, w2, as2, ad2, b2)


def make_params(key):
    ks = jax.random.split(key, 8)
    scale = 0.1
    w1 = scale * jax.random.normal(ks[0], (HIDDEN, HEADS * HIDDEN), jnp.float32)
    as1 = scale * jax.random.normal(ks[1], (HEADS, HIDDEN), jnp.float32)
    ad1 = scale * jax.random.normal(ks[2], (HEADS, HIDDEN), jnp.float32)
    b1 = jnp.zeros((1, HEADS * HIDDEN), jnp.float32)
    w2 = scale * jax.random.normal(ks[3], (HEADS * HIDDEN, HEADS * HIDDEN), jnp.float32)
    as2 = scale * jax.random.normal(ks[4], (HEADS, HIDDEN), jnp.float32)
    ad2 = scale * jax.random.normal(ks[5], (HEADS, HIDDEN), jnp.float32)
    b2 = jnp.zeros((1, HEADS * HIDDEN), jnp.float32)
    return (w1, as1, ad1, b1, w2, as2, ad2, b2)


if __name__ == "__main__":
    key = jax.random.PRNGKey(0)
    k_x, k_src, k_dst, k_p = jax.random.split(key, 4)

    # Node features: (N, hidden_channels)
    x = jax.random.normal(k_x, (N_NODES, HIDDEN), jnp.float32)

    # edge_index: (2, E) with row 0 = source, row 1 = target
    src = jax.random.randint(k_src, (N_EDGES,), 0, N_NODES)
    dst = jax.random.randint(k_dst, (N_EDGES,), 0, N_NODES)
    edge_index = jnp.stack([src, dst], axis=0)

    # Dense adjacency mask: adj[dst, src] = 1.0 (duplicate random edges collapse to one;
    # both kernel and reference see the same deduplicated graph).
    adj = jnp.zeros((N_NODES, N_NODES), jnp.float32).at[edge_index[1], edge_index[0]].set(1.0)

    params = make_params(k_p)

    out = jax.block_until_ready(gnn_forward(x, adj, params))
    ref = gnn_reference(x, adj, params)

    # bf16 MXU operands + approx reciprocal in the kernel vs f32 reference -> loose tolerance.
    np.testing.assert_allclose(np.asarray(out), np.asarray(ref), rtol=5e-2, atol=2e-2)
    assert out.shape == (N_NODES, HEADS * HIDDEN)

    print("KERNEL_OK")
</pallas_src>

<mosaic_0001>
module attributes {stable_mosaic.version = 11 : i64} {
  func.func @gnn_kernel(%arg0: memref<16x32xf32, #tpu.memory_space<vmem>>, %arg1: memref<16x128xf32, #tpu.memory_space<vmem>>, %arg2: memref<32x128xbf16, #tpu.memory_space<vmem>>, %arg3: memref<128x8xbf16, #tpu.memory_space<vmem>>, %arg4: memref<1x128xf32, #tpu.memory_space<vmem>>, %arg5: memref<128x128xbf16, #tpu.memory_space<vmem>>, %arg6: memref<128x8xbf16, #tpu.memory_space<vmem>>, %arg7: memref<1x128xf32, #tpu.memory_space<vmem>>, %arg8: memref<16x128xf32, #tpu.memory_space<vmem>>) attributes {dimension_semantics = [], scalar_prefetch = 0 : i64, scratch_operands = 0 : i64, tpu.core_type = #tpu.core_type<tc>} {
    %c0 = arith.constant 0 : index
    %c0_0 = arith.constant 0 : index
    %0 = vector.load %arg1[%c0, %c0_0] : memref<16x128xf32, #tpu.memory_space<vmem>>, vector<16x128xf32>
    %cst = arith.constant 1.000000e+00 : f32
    %1 = vector.broadcast %cst : f32 to vector<16x128xf32>
    %2 = arith.subf %0, %1 : vector<16x128xf32>
    %cst_1 = arith.constant 1.000000e+30 : f32
    %3 = vector.broadcast %cst_1 : f32 to vector<16x128xf32>
    %4 = arith.mulf %2, %3 : vector<16x128xf32>
    %c0_2 = arith.constant 0 : index
    %c0_3 = arith.constant 0 : index
    %5 = vector.load %arg0[%c0_2, %c0_3] : memref<16x32xf32, #tpu.memory_space<vmem>>, vector<16x32xf32>
    %6 = arith.truncf %5 : vector<16x32xf32> to vector<16x32xbf16>
    %c0_4 = arith.constant 0 : index
    %c0_5 = arith.constant 0 : index
    %7 = vector.load %arg2[%c0_4, %c0_5] : memref<32x128xbf16, #tpu.memory_space<vmem>>, vector<32x128xbf16>
    %cst_6 = arith.constant dense<0.000000e+00> : vector<16x128xf32>
    %8 = tpu.matmul %6, %7, %cst_6 {dimension_numbers = #tpu.dot_dimension_numbers<[1], [0], [0], [1], [0, 0, 1, 1], [], []>} : vector<16x32xbf16>, vector<32x128xbf16>, vector<16x128xf32> -> vector<16x128xf32>
    %9 = arith.truncf %8 : vector<16x128xf32> to vector<16x128xbf16>
    %c0_7 = arith.constant 0 : index
    %c0_8 = arith.constant 0 : index
    %10 = vector.load %arg3[%c0_7, %c0_8] : memref<128x8xbf16, #tpu.memory_space<vmem>>, vector<128x8xbf16>
    %c0_9 = arith.constant 0 : index
    %c0_10 = arith.constant 0 : index
    %11 = vector.load %arg4[%c0_9, %c0_10] : memref<1x128xf32, #tpu.memory_space<vmem>>, vector<1x128xf32>
    %cst_11 = arith.constant 0.000000e+00 : bf16
    %12 = vector.broadcast %cst_11 : bf16 to vector<112x128xbf16>
    %13 = tpu.concatenate %9, %12 in 0 : vector<16x128xbf16>, vector<112x128xbf16> -> vector<128x128xbf16>
    %cst_12 = arith.constant dense<0.000000e+00> : vector<128x8xf32>
    %14 = tpu.matmul %13, %10, %cst_12 {dimension_numbers = #tpu.dot_dimension_numbers<[1], [0], [0], [1], [0, 0, 1, 1], [], []>} : vector<128x128xbf16>, vector<128x8xbf16>, vector<128x8xf32> -> vector<128x8xf32>
    %15 = vector.extract_strided_slice %14 {offsets = [0, 0], sizes = [128, 4], strides = [1, 1]} : vector<128x8xf32> to vector<128x4xf32>
    %16 = tpu.transpose %15, [1, 0] : vector<128x4xf32> -> vector<4x128xf32>
    %17 = vector.extract_strided_slice %14 {offsets = [0, 4], sizes = [16, 4], strides = [1, 1]} : vector<128x8xf32> to vector<16x4xf32>
    %18 = vector.extract_strided_slice %17 {offsets = [0, 0], sizes = [16, 1], strides = [1, 1]} : vector<16x4xf32> to vector<16x1xf32>
    %19 = vector.extract_strided_slice %16 {offsets = [0, 0], sizes = [1, 128], strides = [1, 1]} : vector<4x128xf32> to vector<1x128xf32>
    %20 = vector.broadcast %18 : vector<16x1xf32> to vector<16x128xf32>
    %21 = vector.broadcast %19 : vector<1x128xf32> to vector<16x128xf32>
    %22 = arith.addf %20, %21 : vector<16x128xf32>
    %cst_13 = arith.constant 2.000000e-01 : f32
    %23 = vector.broadcast %cst_13 : f32 to vector<16x128xf32>
    %24 = arith.mulf %23, %22 : vector<16x128xf32>
    %25 = arith.maximumf %22, %24 : vector<16x128xf32>
    %26 = arith.addf %25, %4 : vector<16x128xf32>
    %cst_14 = arith.constant dense<0xFF800000> : vector<16xf32>
    %27 = vector.multi_reduction <maximumf>, %26, %cst_14 [1] : vector<16x128xf32> to vector<16xf32>
    %28 = vector.shape_cast %27 : vector<16xf32> to vector<16x1xf32>
    %29 = vector.broadcast %28 : vector<16x1xf32> to vector<16x128xf32>
    %30 = arith.subf %26, %29 : vector<16x128xf32>
    %31 = math.exp %30 : vector<16x128xf32>
    %32 = arith.mulf %31, %0 : vector<16x128xf32>
    %cst_15 = arith.constant dense<0.000000e+00> : vector<16xf32>
    %33 = vector.multi_reduction <add>, %32, %cst_15 [1] : vector<16x128xf32> to vector<16xf32>
    %34 = vector.shape_cast %33 : vector<16xf32> to vector<16x1xf32>
    %cst_16 = arith.constant 1.000000e-16 : f32
    %35 = vector.broadcast %cst_16 : f32 to vector<16x1xf32>
    %36 = arith.maximumf %34, %35 : vector<16x1xf32>
    %37 = tpu.reciprocal %36 {approx = true} : vector<16x1xf32> -> vector<16x1xf32>
    %38 = arith.truncf %32 : vector<16x128xf32> to vector<16x128xbf16>
    %39 = vector.extract_strided_slice %13 {offsets = [0, 0], sizes = [128, 32], strides = [1, 1]} : vector<128x128xbf16> to vector<128x32xbf16>
    %cst_17 = arith.constant dense<0.000000e+00> : vector<16x32xf32>
    %40 = tpu.matmul %38, %39, %cst_17 {dimension_numbers = #tpu.dot_dimension_numbers<[1], [0], [0], [1], [0, 0, 1, 1], [], []>} : vector<16x128xbf16>, vector<128x32xbf16>, vector<16x32xf32> -> vector<16x32xf32>
    %41 = vector.broadcast %37 : vector<16x1xf32> to vector<16x32xf32>
    %42 = arith.mulf %40, %41 : vector<16x32xf32>
    %43 = vector.extract_strided_slice %17 {offsets = [0, 1], sizes = [16, 1], strides = [1, 1]} : vector<16x4xf32> to vector<16x1xf32>
    %44 = vector.extract_strided_slice %16 {offsets = [1, 0], sizes = [1, 128], strides = [1, 1]} : vector<4x128xf32> to vector<1x128xf32>
    %45 = vector.broadcast %43 : vector<16x1xf32> to vector<16x128xf32>
    %46 = vector.broadcast %44 : vector<1x128xf32> to vector<16x128xf32>
    %47 = arith.addf %45, %46 : vector<16x128xf32>
    %cst_18 = arith.constant 2.000000e-01 : f32
    %48 = vector.broadcast %cst_18 : f32 to vector<16x128xf32>
    %49 = arith.mulf %48, %47 : vector<16x128xf32>
    %50 = arith.maximumf %47, %49 : vector<16x128xf32>
    %51 = arith.addf %50, %4 : vector<16x128xf32>
    %cst_19 = arith.constant dense<0xFF800000> : vector<16xf32>
    %52 = vector.multi_reduction <maximumf>, %51, %cst_19 [1] : vector<16x128xf32> to vector<16xf32>
    %53 = vector.shape_cast %52 : vector<16xf32> to vector<16x1xf32>
    %54 = vector.broadcast %53 : vector<16x1xf32> to vector<16x128xf32>
    %55 = arith.subf %51, %54 : vector<16x128xf32>
    %56 = math.exp %55 : vector<16x128xf32>
    %57 = arith.mulf %56, %0 : vector<16x128xf32>
    %cst_20 = arith.constant dense<0.000000e+00> : vector<16xf32>
    %58 = vector.multi_reduction <add>, %57, %cst_20 [1] : vector<16x128xf32> to vector<16xf32>
    %59 = vector.shape_cast %58 : vector<16xf32> to vector<16x1xf32>
    %cst_21 = arith.constant 1.000000e-16 : f32
    %60 = vector.broadcast %cst_21 : f32 to vector<16x1xf32>
    %61 = arith.maximumf %59, %60 : vector<16x1xf32>
    %62 = tpu.reciprocal %61 {approx = true} : vector<16x1xf32> -> vector<16x1xf32>
    %63 = arith.truncf %57 : vector<16x128xf32> to vector<16x128xbf16>
    %64 = vector.extract_strided_slice %13 {offsets = [0, 32], sizes = [128, 32], strides = [1, 1]} : vector<128x128xbf16> to vector<128x32xbf16>
    %cst_22 = arith.constant dense<0.000000e+00> : vector<16x32xf32>
    %65 = tpu.matmul %63, %64, %cst_22 {dimension_numbers = #tpu.dot_dimension_numbers<[1], [0], [0], [1], [0, 0, 1, 1], [], []>} : vector<16x128xbf16>, vector<128x32xbf16>, vector<16x32xf32> -> vector<16x32xf32>
    %66 = vector.broadcast %62 : vector<16x1xf32> to vector<16x32xf32>
    %67 = arith.mulf %65, %66 : vector<16x32xf32>
    %68 = vector.extract_strided_slice %17 {offsets = [0, 2], sizes = [16, 1], strides = [1, 1]} : vector<16x4xf32> to vector<16x1xf32>
    %69 = vector.extract_strided_slice %16 {offsets = [2, 0], sizes = [1, 128], strides = [1, 1]} : vector<4x128xf32> to vector<1x128xf32>
    %70 = vector.broadcast %68 : vector<16x1xf32> to vector<16x128xf32>
    %71 = vector.broadcast %69 : vector<1x128xf32> to vector<16x128xf32>
    %72 = arith.addf %70, %71 : vector<16x128xf32>
    %cst_23 = arith.constant 2.000000e-01 : f32
    %73 = vector.broadcast %cst_23 : f32 to vector<16x128xf32>
    %74 = arith.mulf %73, %72 : vector<16x128xf32>
    %75 = arith.maximumf %72, %74 : vector<16x128xf32>
    %76 = arith.addf %75, %4 : vector<16x128xf32>
    %cst_24 = arith.constant dense<0xFF800000> : vector<16xf32>
    %77 = vector.multi_reduction <maximumf>, %76, %cst_24 [1] : vector<16x128xf32> to vector<16xf32>
    %78 = vector.shape_cast %77 : vector<16xf32> to vector<16x1xf32>
    %79 = vector.broadcast %78 : vector<16x1xf32> to vector<16x128xf32>
    %80 = arith.subf %76, %79 : vector<16x128xf32>
    %81 = math.exp %80 : vector<16x128xf32>
    %82 = arith.mulf %81, %0 : vector<16x128xf32>
    %cst_25 = arith.constant dense<0.000000e+00> : vector<16xf32>
    %83 = vector.multi_reduction <add>, %82, %cst_25 [1] : vector<16x128xf32> to vector<16xf32>
    %84 = vector.shape_cast %83 : vector<16xf32> to vector<16x1xf32>
    %cst_26 = arith.constant 1.000000e-16 : f32
    %85 = vector.broadcast %cst_26 : f32 to vector<16x1xf32>
    %86 = arith.maximumf %84, %85 : vector<16x1xf32>
    %87 = tpu.reciprocal %86 {approx = true} : vector<16x1xf32> -> vector<16x1xf32>
    %88 = arith.truncf %82 : vector<16x128xf32> to vector<16x128xbf16>
    %89 = vector.extract_strided_slice %13 {offsets = [0, 64], sizes = [128, 32], strides = [1, 1]} : vector<128x128xbf16> to vector<128x32xbf16>
    %cst_27 = arith.constant dense<0.000000e+00> : vector<16x32xf32>
    %90 = tpu.matmul %88, %89, %cst_27 {dimension_numbers = #tpu.dot_dimension_numbers<[1], [0], [0], [1], [0, 0, 1, 1], [], []>} : vector<16x128xbf16>, vector<128x32xbf16>, vector<16x32xf32> -> vector<16x32xf32>
    %91 = vector.broadcast %87 : vector<16x1xf32> to vector<16x32xf32>
    %92 = arith.mulf %90, %91 : vector<16x32xf32>
    %93 = vector.extract_strided_slice %17 {offsets = [0, 3], sizes = [16, 1], strides = [1, 1]} : vector<16x4xf32> to vector<16x1xf32>
    %94 = vector.extract_strided_slice %16 {offsets = [3, 0], sizes = [1, 128], strides = [1, 1]} : vector<4x128xf32> to vector<1x128xf32>
    %95 = vector.broadcast %93 : vector<16x1xf32> to vector<16x128xf32>
    %96 = vector.broadcast %94 : vector<1x128xf32> to vector<16x128xf32>
    %97 = arith.addf %95, %96 : vector<16x128xf32>
    %cst_28 = arith.constant 2.000000e-01 : f32
    %98 = vector.broadcast %cst_28 : f32 to vector<16x128xf32>
    %99 = arith.mulf %98, %97 : vector<16x128xf32>
    %100 = arith.maximumf %97, %99 : vector<16x128xf32>
    %101 = arith.addf %100, %4 : vector<16x128xf32>
    %cst_29 = arith.constant dense<0xFF800000> : vector<16xf32>
    %102 = vector.multi_reduction <maximumf>, %101, %cst_29 [1] : vector<16x128xf32> to vector<16xf32>
    %103 = vector.shape_cast %102 : vector<16xf32> to vector<16x1xf32>
    %104 = vector.broadcast %103 : vector<16x1xf32> to vector<16x128xf32>
    %105 = arith.subf %101, %104 : vector<16x128xf32>
    %106 = math.exp %105 : vector<16x128xf32>
    %107 = arith.mulf %106, %0 : vector<16x128xf32>
    %cst_30 = arith.constant dense<0.000000e+00> : vector<16xf32>
    %108 = vector.multi_reduction <add>, %107, %cst_30 [1] : vector<16x128xf32> to vector<16xf32>
    %109 = vector.shape_cast %108 : vector<16xf32> to vector<16x1xf32>
    %cst_31 = arith.constant 1.000000e-16 : f32
    %110 = vector.broadcast %cst_31 : f32 to vector<16x1xf32>
    %111 = arith.maximumf %109, %110 : vector<16x1xf32>
    %112 = tpu.reciprocal %111 {approx = true} : vector<16x1xf32> -> vector<16x1xf32>
    %113 = arith.truncf %107 : vector<16x128xf32> to vector<16x128xbf16>
    %114 = vector.extract_strided_slice %13 {offsets = [0, 96], sizes = [128, 32], strides = [1, 1]} : vector<128x128xbf16> to vector<128x32xbf16>
    %cst_32 = arith.constant dense<0.000000e+00> : vector<16x32xf32>
    %115 = tpu.matmul %113, %114, %cst_32 {dimension_numbers = #tpu.dot_dimension_numbers<[1], [0], [0], [1], [0, 0, 1, 1], [], []>} : vector<16x128xbf16>, vector<128x32xbf16>, vector<16x32xf32> -> vector<16x32xf32>
    %116 = vector.broadcast %112 : vector<16x1xf32> to vector<16x32xf32>
    %117 = arith.mulf %115, %116 : vector<16x32xf32>
    %118 = tpu.concatenate %42, %67, %92, %117 in 1 : vector<16x32xf32>, vector<16x32xf32>, vector<16x32xf32>, vector<16x32xf32> -> vector<16x128xf32>
    %119 = vector.broadcast %11 : vector<1x128xf32> to vector<16x128xf32>
    %120 = arith.addf %118, %119 : vector<16x128xf32>
    %cst_33 = arith.constant 0.000000e+00 : f32
    %121 = vector.broadcast %cst_33 : f32 to vector<16x128xf32>
    %122 = arith.maximumf %120, %121 : vector<16x128xf32>
    %123 = arith.truncf %122 : vector<16x128xf32> to vector<16x128xbf16>
    %c0_34 = arith.constant 0 : index
    %c0_35 = arith.constant 0 : index
    %124 = vector.load %arg5[%c0_34, %c0_35] : memref<128x128xbf16, #tpu.memory_space<vmem>>, vector<128x128xbf16>
    %cst_36 = arith.constant dense<0.000000e+00> : vector<16x128xf32>
    %125 = tpu.matmul %123, %124, %cst_36 {dimension_numbers = #tpu.dot_dimension_numbers<[1], [0], [0], [1], [0, 0, 1, 1], [], []>} : vector<16x128xbf16>, vector<128x128xbf16>, vector<16x128xf32> -> vector<16x128xf32>
    %126 = arith.truncf %125 : vector<16x128xf32> to vector<16x128xbf16>
    %c0_37 = arith.constant 0 : index
    %c0_38 = arith.constant 0 : index
    %127 = vector.load %arg6[%c0_37, %c0_38] : memref<128x8xbf16, #tpu.memory_space<vmem>>, vector<128x8xbf16>
    %c0_39 = arith.constant 0 : index
    %c0_40 = arith.constant 0 : index
    %128 = vector.load %arg7[%c0_39, %c0_40] : memref<1x128xf32, #tpu.memory_space<vmem>>, vector<1x128xf32>
    %cst_41 = arith.constant 0.000000e+00 : bf16
    %129 = vector.broadcast %cst_41 : bf16 to vector<112x128xbf16>
    %130 = tpu.concatenate %126, %129 in 0 : vector<16x128xbf16>, vector<112x128xbf16> -> vector<128x128xbf16>
    %cst_42 = arith.constant dense<0.000000e+00> : vector<128x8xf32>
    %131 = tpu.matmul %130, %127, %cst_42 {dimension_numbers = #tpu.dot_dimension_numbers<[1], [0], [0], [1], [0, 0, 1, 1], [], []>} : vector<128x128xbf16>, vector<128x8xbf16>, vector<128x8xf32> -> vector<128x8xf32>
    %132 = vector.extract_strided_slice %131 {offsets = [0, 0], sizes = [128, 4], strides = [1, 1]} : vector<128x8xf32> to vector<128x4xf32>
    %133 = tpu.transpose %132, [1, 0] : vector<128x4xf32> -> vector<4x128xf32>
    %134 = vector.extract_strided_slice %131 {offsets = [0, 4], sizes = [16, 4], strides = [1, 1]} : vector<128x8xf32> to vector<16x4xf32>
    %135 = vector.extract_strided_slice %134 {offsets = [0, 0], sizes = [16, 1], strides = [1, 1]} : vector<16x4xf32> to vector<16x1xf32>
    %136 = vector.extract_strided_slice %133 {offsets = [0, 0], sizes = [1, 128], strides = [1, 1]} : vector<4x128xf32> to vector<1x128xf32>
    %137 = vector.broadcast %135 : vector<16x1xf32> to vector<16x128xf32>
    %138 = vector.broadcast %136 : vector<1x128xf32> to vector<16x128xf32>
    %139 = arith.addf %137, %138 : vector<16x128xf32>
    %cst_43 = arith.constant 2.000000e-01 : f32
    %140 = vector.broadcast %cst_43 : f32 to vector<16x128xf32>
    %141 = arith.mulf %140, %139 : vector<16x128xf32>
    %142 = arith.maximumf %139, %141 : vector<16x128xf32>
    %143 = arith.addf %142, %4 : vector<16x128xf32>
    %cst_44 = arith.constant dense<0xFF800000> : vector<16xf32>
    %144 = vector.multi_reduction <maximumf>, %143, %cst_44 [1] : vector<16x128xf32> to vector<16xf32>
    %145 = vector.shape_cast %144 : vector<16xf32> to vector<16x1xf32>
    %146 = vector.broadcast %145 : vector<16x1xf32> to vector<16x128xf32>
    %147 = arith.subf %143, %146 : vector<16x128xf32>
    %148 = math.exp %147 : vector<16x128xf32>
    %149 = arith.mulf %148, %0 : vector<16x128xf32>
    %cst_45 = arith.constant dense<0.000000e+00> : vector<16xf32>
    %150 = vector.multi_reduction <add>, %149, %cst_45 [1] : vector<16x128xf32> to vector<16xf32>
    %151 = vector.shape_cast %150 : vector<16xf32> to vector<16x1xf32>
    %cst_46 = arith.constant 1.000000e-16 : f32
    %152 = vector.broadcast %cst_46 : f32 to vector<16x1xf32>
    %153 = arith.maximumf %151, %152 : vector<16x1xf32>
    %154 = tpu.reciprocal %153 {approx = true} : vector<16x1xf32> -> vector<16x1xf32>
    %155 = arith.truncf %149 : vector<16x128xf32> to vector<16x128xbf16>
    %156 = vector.extract_strided_slice %130 {offsets = [0, 0], sizes = [128, 32], strides = [1, 1]} : vector<128x128xbf16> to vector<128x32xbf16>
    %cst_47 = arith.constant dense<0.000000e+00> : vector<16x32xf32>
    %157 = tpu.matmul %155, %156, %cst_47 {dimension_numbers = #tpu.dot_dimension_numbers<[1], [0], [0], [1], [0, 0, 1, 1], [], []>} : vector<16x128xbf16>, vector<128x32xbf16>, vector<16x32xf32> -> vector<16x32xf32>
    %158 = vector.broadcast %154 : vector<16x1xf32> to vector<16x32xf32>
    %159 = arith.mulf %157, %158 : vector<16x32xf32>
    %160 = vector.extract_strided_slice %134 {offsets = [0, 1], sizes = [16, 1], strides = [1, 1]} : vector<16x4xf32> to vector<16x1xf32>
    %161 = vector.extract_strided_slice %133 {offsets = [1, 0], sizes = [1, 128], strides = [1, 1]} : vector<4x128xf32> to vector<1x128xf32>
    %162 = vector.broadcast %160 : vector<16x1xf32> to vector<16x128xf32>
    %163 = vector.broadcast %161 : vector<1x128xf32> to vector<16x128xf32>
    %164 = arith.addf %162, %163 : vector<16x128xf32>
    %cst_48 = arith.constant 2.000000e-01 : f32
    %165 = vector.broadcast %cst_48 : f32 to vector<16x128xf32>
    %166 = arith.mulf %165, %164 : vector<16x128xf32>
    %167 = arith.maximumf %164, %166 : vector<16x128xf32>
    %168 = arith.addf %167, %4 : vector<16x128xf32>
    %cst_49 = arith.constant dense<0xFF800000> : vector<16xf32>
    %169 = vector.multi_reduction <maximumf>, %168, %cst_49 [1] : vector<16x128xf32> to vector<16xf32>
    %170 = vector.shape_cast %169 : vector<16xf32> to vector<16x1xf32>
    %171 = vector.broadcast %170 : vector<16x1xf32> to vector<16x128xf32>
    %172 = arith.subf %168, %171 : vector<16x128xf32>
    %173 = math.exp %172 : vector<16x128xf32>
    %174 = arith.mulf %173, %0 : vector<16x128xf32>
    %cst_50 = arith.constant dense<0.000000e+00> : vector<16xf32>
    %175 = vector.multi_reduction <add>, %174, %cst_50 [1] : vector<16x128xf32> to vector<16xf32>
    %176 = vector.shape_cast %175 : vector<16xf32> to vector<16x1xf32>
    %cst_51 = arith.constant 1.000000e-16 : f32
    %177 = vector.broadcast %cst_51 : f32 to vector<16x1xf32>
    %178 = arith.maximumf %176, %177 : vector<16x1xf32>
    %179 = tpu.reciprocal %178 {approx = true} : vector<16x1xf32> -> vector<16x1xf32>
    %180 = arith.truncf %174 : vector<16x128xf32> to vector<16x128xbf16>
    %181 = vector.extract_strided_slice %130 {offsets = [0, 32], sizes = [128, 32], strides = [1, 1]} : vector<128x128xbf16> to vector<128x32xbf16>
    %cst_52 = arith.constant dense<0.000000e+00> : vector<16x32xf32>
    %182 = tpu.matmul %180, %181, %cst_52 {dimension_numbers = #tpu.dot_dimension_numbers<[1], [0], [0], [1], [0, 0, 1, 1], [], []>} : vector<16x128xbf16>, vector<128x32xbf16>, vector<16x32xf32> -> vector<16x32xf32>
    %183 = vector.broadcast %179 : vector<16x1xf32> to vector<16x32xf32>
    %184 = arith.mulf %182, %183 : vector<16x32xf32>
    %185 = vector.extract_strided_slice %134 {offsets = [0, 2], sizes = [16, 1], strides = [1, 1]} : vector<16x4xf32> to vector<16x1xf32>
    %186 = vector.extract_strided_slice %133 {offsets = [2, 0], sizes = [1, 128], strides = [1, 1]} : vector<4x128xf32> to vector<1x128xf32>
    %187 = vector.broadcast %185 : vector<16x1xf32> to vector<16x128xf32>
    %188 = vector.broadcast %186 : vector<1x128xf32> to vector<16x128xf32>
    %189 = arith.addf %187, %188 : vector<16x128xf32>
    %cst_53 = arith.constant 2.000000e-01 : f32
    %190 = vector.broadcast %cst_53 : f32 to vector<16x128xf32>
    %191 = arith.mulf %190, %189 : vector<16x128xf32>
    %192 = arith.maximumf %189, %191 : vector<16x128xf32>
    %193 = arith.addf %192, %4 : vector<16x128xf32>
    %cst_54 = arith.constant dense<0xFF800000> : vector<16xf32>
    %194 = vector.multi_reduction <maximumf>, %193, %cst_54 [1] : vector<16x128xf32> to vector<16xf32>
    %195 = vector.shape_cast %194 : vector<16xf32> to vector<16x1xf32>
    %196 = vector.broadcast %195 : vector<16x1xf32> to vector<16x128xf32>
    %197 = arith.subf %193, %196 : vector<16x128xf32>
    %198 = math.exp %197 : vector<16x128xf32>
    %199 = arith.mulf %198, %0 : vector<16x128xf32>
    %cst_55 = arith.constant dense<0.000000e+00> : vector<16xf32>
    %200 = vector.multi_reduction <add>, %199, %cst_55 [1] : vector<16x128xf32> to vector<16xf32>
    %201 = vector.shape_cast %200 : vector<16xf32> to vector<16x1xf32>
    %cst_56 = arith.constant 1.000000e-16 : f32
    %202 = vector.broadcast %cst_56 : f32 to vector<16x1xf32>
    %203 = arith.maximumf %201, %202 : vector<16x1xf32>
    %204 = tpu.reciprocal %203 {approx = true} : vector<16x1xf32> -> vector<16x1xf32>
    %205 = arith.truncf %199 : vector<16x128xf32> to vector<16x128xbf16>
    %206 = vector.extract_strided_slice %130 {offsets = [0, 64], sizes = [128, 32], strides = [1, 1]} : vector<128x128xbf16> to vector<128x32xbf16>
    %cst_57 = arith.constant dense<0.000000e+00> : vector<16x32xf32>
    %207 = tpu.matmul %205, %206, %cst_57 {dimension_numbers = #tpu.dot_dimension_numbers<[1], [0], [0], [1], [0, 0, 1, 1], [], []>} : vector<16x128xbf16>, vector<128x32xbf16>, vector<16x32xf32> -> vector<16x32xf32>
    %208 = vector.broadcast %204 : vector<16x1xf32> to vector<16x32xf32>
    %209 = arith.mulf %207, %208 : vector<16x32xf32>
    %210 = vector.extract_strided_slice %134 {offsets = [0, 3], sizes = [16, 1], strides = [1, 1]} : vector<16x4xf32> to vector<16x1xf32>
    %211 = vector.extract_strided_slice %133 {offsets = [3, 0], sizes = [1, 128], strides = [1, 1]} : vector<4x128xf32> to vector<1x128xf32>
    %212 = vector.broadcast %210 : vector<16x1xf32> to vector<16x128xf32>
    %213 = vector.broadcast %211 : vector<1x128xf32> to vector<16x128xf32>
    %214 = arith.addf %212, %213 : vector<16x128xf32>
    %cst_58 = arith.constant 2.000000e-01 : f32
    %215 = vector.broadcast %cst_58 : f32 to vector<16x128xf32>
    %216 = arith.mulf %215, %214 : vector<16x128xf32>
    %217 = arith.maximumf %214, %216 : vector<16x128xf32>
    %218 = arith.addf %217, %4 : vector<16x128xf32>
    %cst_59 = arith.constant dense<0xFF800000> : vector<16xf32>
    %219 = vector.multi_reduction <maximumf>, %218, %cst_59 [1] : vector<16x128xf32> to vector<16xf32>
    %220 = vector.shape_cast %219 : vector<16xf32> to vector<16x1xf32>
    %221 = vector.broadcast %220 : vector<16x1xf32> to vector<16x128xf32>
    %222 = arith.subf %218, %221 : vector<16x128xf32>
    %223 = math.exp %222 : vector<16x128xf32>
    %224 = arith.mulf %223, %0 : vector<16x128xf32>
    %cst_60 = arith.constant dense<0.000000e+00> : vector<16xf32>
    %225 = vector.multi_reduction <add>, %224, %cst_60 [1] : vector<16x128xf32> to vector<16xf32>
    %226 = vector.shape_cast %225 : vector<16xf32> to vector<16x1xf32>
    %cst_61 = arith.constant 1.000000e-16 : f32
    %227 = vector.broadcast %cst_61 : f32 to vector<16x1xf32>
    %228 = arith.maximumf %226, %227 : vector<16x1xf32>
    %229 = tpu.reciprocal %228 {approx = true} : vector<16x1xf32> -> vector<16x1xf32>
    %230 = arith.truncf %224 : vector<16x128xf32> to vector<16x128xbf16>
    %231 = vector.extract_strided_slice %130 {offsets = [0, 96], sizes = [128, 32], strides = [1, 1]} : vector<128x128xbf16> to vector<128x32xbf16>
    %cst_62 = arith.constant dense<0.000000e+00> : vector<16x32xf32>
    %232 = tpu.matmul %230, %231, %cst_62 {dimension_numbers = #tpu.dot_dimension_numbers<[1], [0], [0], [1], [0, 0, 1, 1], [], []>} : vector<16x128xbf16>, vector<128x32xbf16>, vector<16x32xf32> -> vector<16x32xf32>
    %233 = vector.broadcast %229 : vector<16x1xf32> to vector<16x32xf32>
    %234 = arith.mulf %232, %233 : vector<16x32xf32>
    %235 = tpu.concatenate %159, %184, %209, %234 in 1 : vector<16x32xf32>, vector<16x32xf32>, vector<16x32xf32>, vector<16x32xf32> -> vector<16x128xf32>
    %236 = vector.broadcast %128 : vector<1x128xf32> to vector<16x128xf32>
    %237 = arith.addf %235, %236 : vector<16x128xf32>
    %c0_63 = arith.constant 0 : index
    %c0_64 = arith.constant 0 : index
    %238 = vector.load %arg8[%c0_63, %c0_64] : memref<16x128xf32, #tpu.memory_space<vmem>>, vector<16x128xf32>
    tpu.vector_store %arg8[%c0_63, %c0_64], %237 {strides = array<i32>} : memref<16x128xf32, #tpu.memory_space<vmem>>, vector<16x128xf32>,
    return
  }
}

</mosaic_0001>

<bundles_post_ra>
// kernel: tpu_custom_call.1
= control target key start
LH: loop header
LB: loop body
LE: loop exit
PB: predicated region body
PF: predicated region fallthrough
CT: control target
= control target key end

     0   :  { %s1592_s0 = inlined_call_operand.vmem [shape: f32[16,32], index: 0, kind: input, shape index: {}]   ;;  %s1593_s1 = inlined_call_operand.vmem [shape: f32[16,128], index: 1, kind: input, shape index: {}]   ;;  %s1594_s2 = inlined_call_operand.vmem [shape: bf16[32,128], index: 2, kind: input, shape index: {}]   ;;  %s1595_s3 = inlined_call_operand.vmem [shape: bf16[128,8], index: 3, kind: input, shape index: {}]   ;;  %s1596_s4 = inlined_call_operand.vmem [shape: f32[1,128], index: 4, kind: input, shape index: {}]   ;;  %s1597_s5 = inlined_call_operand.vmem [shape: bf16[128,128], index: 5, kind: input, shape index: {}]   ;;  %s1598_s6 = inlined_call_operand.vmem [shape: bf16[128,8], index: 6, kind: input, shape index: {}]   ;;  %s1599_s7 = inlined_call_operand.vmem [shape: f32[1,128], index: 7, kind: input, shape index: {}]   ;;  %s1600_s8 = inlined_call_operand.hbm [shape: f32[16,128], index: 8, kind: output, shape index: {}]  }
   0x1   :  { %v1127_v0 = vld [vmem:[%s1594_s2 + $0x8] sm:$0xff]  ;;  %v1126_v1 = vld [vmem:[%s1594_s2] sm:$0xff]  ;;  %v1135_v2 = vld [vmem:[%s1595_s3 + $0x38] sm:$0xff] }
   0x2   :  { %66 = vmatpush.bf16.msra.mxu0 %v1127_v0  ;;  %v37_v3 = vld [vmem:[%s1592_s0] sm:$0xff]  ;;  %v38_v4 = vld [vmem:[%s1592_s0 + $0x8] sm:$0xff]  ;;  %147 = vmatpush.bf16.msra.mxu1 %v1135_v2  ;;  %v1134_v5 = vld [vmem:[%s1595_s3 + $0x30] sm:$0xff] }
   0x3   :  { %13 = vsyncpa [#allocation3], 0  ;;  %v39_v6 = vpack.c.bf16 %v38_v4, %v37_v3  ;;  %vm56_vm0 = vcmask 261120   ;;  %v1133_v7 = vld [vmem:[%s1595_s3 + $0x28] sm:$0xff]  ;;  %v1132_v8 = vld [vmem:[%s1595_s3 + $0x20] sm:$0xff]  ;;  %v1267_v20 = vmov 0  }
   0x4   :  { %v1131_v9 = vld [vmem:[%s1595_s3 + $0x18] sm:$0xff]  ;;  %v1130_v10 = vld [vmem:[%s1595_s3 + $0x10] sm:$0xff]  ;;  %v1129_v11 = vld [vmem:[%s1595_s3 + $0x8] sm:$0xff]  ;;  %v1268_v21 = vmov 6   ;;  %v1269_v22 = vmov 5   ;;  %v1270_v23 = vmov 4  }
   0x5   :  { %v1128_v12 = vld [vmem:[%s1595_s3] sm:$0xff]  ;;  %1165 = vset.pattern.permute.xlu2 %v1268_v21  ;;  %1163 = vset.pattern.permute.xlu0 %v1269_v22  ;;  %v1271_v26 = vmov 7   ;;  %s1272_s3 = smov 96   ;;  %s1273_s27 = smov 64   ;;  %v1403_v52 = vld [vmem:[%s1593_s1 + $0x8] sm:$0xff]  ;;  %vm491_vm1 = vcmask 523264  }
   0x6   :  { %67 = vmatpush.bf16.msra.mxu0 %v1126_v1  ;;  %148 = vmatpush.bf16.msra.mxu1 %v1134_v5  ;;  %s1274_s28 = smov 32   ;;  %v1408_v53 = vld [vmem:[%s1593_s1] sm:$0xff]  ;;  %v1020_v55 = vadd.f32 -1.0, %v1403_v52  ;;  %vm494_vm2 = vcmask 785408   ;;  %s1007_s0 = sshll.u32 %s1600_s8, 4  ;;  %s1008_s0 = int_to_ptr.hbm [resolvable:$true] %s1007_s0 }
   0x7   :  { %1164 = vset.pattern.permute.xlu1 %v1270_v23  ;;  %v1019_v56 = vadd.f32 -1.0, %v1408_v53  ;;  %s1277_s20 = smov 8  }
   0x8   :  { %v1415_v63 = vmul.f32 1e+30, %v1020_v55 }
   0x9   :  { %1029 = vmatmul.msk.bf16.vlgmr.msra.gmra.mxu0 %vm56_vm0, %v39_v6  ;;  %v1417_v0 = vmul.f32 1e+30, %v1019_v56 }
   0xa   :  { %149 = vmatpush.bf16.msra.mxu1 %v1133_v7 }
   0xe   :  { %150 = vmatpush.bf16.msra.mxu1 %v1132_v8 }
  0x12   :  { %151 = vmatpush.bf16.msra.mxu1 %v1131_v9 }
  0x16   :  { %152 = vmatpush.bf16.msra.mxu1 %v1130_v10 }
  0x1a   :  { %153 = vmatpush.bf16.msra.mxu1 %v1129_v11 }
  0x1e   :  { %154 = vmatpush.bf16.msra.mxu1 %v1128_v12 }
  0x86   :  { %v69_v13 = vpop.f32.mrf.mxu0 }
  0x87   :  { %v74_v14 = vpack.c.bf16 %v69_v13, %v69_v13 }
  0x89   :  { %v95_v17 = vunpack.c.l.b16 %v74_v14 }
  0x8e   :  { %v71_v15 = vpop.f32.mrf.mxu0 }
  0x8f   :  { %v75_v16 = vpack.c.bf16 %v71_v15, %v71_v15 }
  0x91   :  { %v96_v18 = vunpack.c.l.b16 %v75_v16 }
  0x93   :  { %v1360_v19 = vpack.c.b16 %v96_v18, %v95_v17 }
  0x95   :  { %155 = vmatmul.bf16.vlgmr.msra.gmra.mxu1 %v1360_v19  ;;  %275 = vmatpush.bf16.msrb.mxu0 %v1360_v19 }
  0xa5   :  { %160 = vmatmul.bf16.gmra.mxu1 %v1267_v20 }
  0xb5   :  { %165 = vmatmul.bf16.gmra.mxu1 %v1267_v20 }
  0xc5   :  { %170 = vmatmul.bf16.gmra.mxu1 %v1267_v20 }
  0xd5   :  { %175 = vmatmul.bf16.gmra.mxu1 %v1267_v20 }
  0xe5   :  { %180 = vmatmul.bf16.gmra.mxu1 %v1267_v20 }
  0xf5   :  { %185 = vmatmul.bf16.gmra.mxu1 %v1267_v20 }
 0x105   :  { %190 = vmatmul.bf16.gmra.mxu1 %v1267_v20 }
 0x112   :  { %v156_v24 = vpop.f32.mrf.mxu1 }
 0x113   :  { %346 = vperm.xlu2 %1165, %v156_v24   ;;  %230 = vperm.xlu1 %1164, %v156_v24  }
 0x114   :  { %285 = vperm.xlu0 %1163, %v156_v24  }
 0x11a   :  { %v158_v25 = vpop.f32.mrf.mxu1 }
 0x11b   :  { %350 = vperm.xlu2 %1165, %v158_v25   ;;  %235 = vperm.xlu1 %1164, %v158_v25  }
 0x11c   :  { %289 = vperm.xlu0 %1163, %v158_v25  }
 0x122   :  { %v161_v27 = vpop.f32.mrf.mxu1 }
 0x123   :  { %1167 = vset.pattern.permute.xlu2 %v1271_v26  ;;  %1166 = vset.pattern.permute.xlu1 %v1271_v26 }
 0x124   :  { %410 = vperm.xlu2 %1167, %v158_v25   ;;  %406 = vperm.xlu1 %1166, %v156_v24  }
 0x12a   :  { %v163_v28 = vpop.f32.mrf.mxu1 }
 0x12c   :  { %325 = vrot.lane.b32.xlu1 %v1267_v20, %s1272_s3  ;;  %385 = vrot.lane.b32.xlu2 %v1267_v20, %s1273_s27 }
 0x12d   :  { %1169 = vset.pattern.permute.xlu2 %v1269_v22  ;;  %1168 = vset.pattern.permute.xlu1 %v1270_v23 }
 0x132   :  { %v166_v29 = vpop.f32.mrf.mxu1 }
 0x134   :  { %323 = vrot.lane.b32.xlu1 %v1360_v19, %s1272_s3  ;;  %445 = vrot.lane.b32.xlu2 %v1267_v20, %s1274_s28 }
 0x13a   :  { %v168_v30 = vpop.f32.mrf.mxu1 }
 0x13e   :  { %196 = vxpose.xlu0.b32.start [1/16] (narrow) %v156_v24, 8 }
 0x142   :  { %v171_v31 = vpop.f32.mrf.mxu1 }
 0x146   :  { %197 = vxpose.xlu0.b32.cont [2/16] (narrow) %v158_v25, 8 }
 0x14a   :  { %v173_v32 = vpop.f32.mrf.mxu1 }
 0x14e   :  { %198 = vxpose.xlu0.b32.cont [3/16] (narrow) %v161_v27, 8 }
 0x152   :  { %v176_v33 = vpop.f32.mrf.mxu1 }
 0x156   :  { %199 = vxpose.xlu0.b32.cont [4/16] (narrow) %v163_v28, 8 }
 0x15a   :  { %v178_v34 = vpop.f32.mrf.mxu1 }
 0x15e   :  { %200 = vxpose.xlu0.b32.cont [5/16] (narrow) %v166_v29, 8 }
 0x162   :  { %v181_v35 = vpop.f32.mrf.mxu1 }
 0x166   :  { %201 = vxpose.xlu0.b32.cont [6/16] (narrow) %v168_v30, 8 }
 0x16a   :  { %v183_v37 = vpop.f32.mrf.mxu1 }
 0x16d   :  { %v347_v46 = vpop.permute.xlu2 %346 }
 0x16e   :  { %202 = vxpose.xlu0.b32.cont [7/16] (narrow) %v171_v31, 8 }
 0x172   :  { %v186_v40 = vpop.f32.mrf.mxu1 }
 0x175   :  { %v351_v47 = vpop.permute.xlu2 %350 }
 0x176   :  { %203 = vxpose.xlu0.b32.cont [8/16] (narrow) %v173_v32, 8 }
 0x17a   :  { %v188_v42 = vpop.f32.mrf.mxu1 }
 0x17e   :  { %204 = vxpose.xlu0.b32.cont [9/16] (narrow) %v176_v33, 8  ;;  %v411_v49 = vpop.permute.xlu2 %410 }
 0x182   :  { %v191_v43 = vpop.f32.mrf.mxu1 }
 0x185   :  { %v231_v36 = vpop.permute.xlu1 %230 }
 0x186   :  { %205 = vxpose.xlu0.b32.cont [10/16] (narrow) %v178_v34, 8  ;;  %v286_v48 = vpop.permute.xlu0 %285  ;;  %v1397_v51 = vpop.permute.xlu2 %385 }
 0x18a   :  { %v193_v44 = vpop.f32.mrf.mxu1 }
 0x18d   :  { %v1386_v38 = vpop.permute.xlu1 %235 }
 0x18e   :  { %206 = vxpose.xlu0.b32.cont [11/16] (narrow) %v181_v35, 8  ;;  %v290_v50 = vpop.permute.xlu0 %289  ;;  %v1413_v62 = vpop.permute.xlu2 %445 }
 0x18f   :  { %449 = vmatpush.bf16.msra.mxu0 %v1413_v62 }
 0x193   :  { %450 = vmatpush.bf16.msra.mxu0 %v1413_v62 }
 0x196   :  { %207 = vxpose.xlu0.b32.cont [12/16] (narrow) %v183_v37, 8  ;;  %v407_v39 = vpop.permute.xlu1 %406 }
 0x197   :  { %451 = vmatpush.bf16.msra.mxu0 %v1413_v62 }
 0x19b   :  { %452 = vmatpush.bf16.msra.mxu0 %v1413_v62 }
 0x19e   :  { %208 = vxpose.xlu0.b32.cont [13/16] (narrow) %v186_v40, 8  ;;  %v1388_v41 = vpop.permute.xlu1 %325 }
 0x19f   :  { %329 = vmatpush.bf16.msra.mxu3 %v1388_v41  ;;  %453 = vmatpush.bf16.msra.mxu0 %v1413_v62 }
 0x1a3   :  { %330 = vmatpush.bf16.msra.mxu3 %v1388_v41  ;;  %454 = vmatpush.bf16.msra.mxu0 %v1413_v62 }
 0x1a6   :  { %209 = vxpose.xlu0.b32.cont [14/16] (narrow) %v188_v42, 8  ;;  %v324_v45 = vpop.permute.xlu1 %323 }
 0x1a7   :  { %331 = vmatpush.bf16.msra.mxu3 %v1388_v41  ;;  %455 = vmatpush.bf16.msra.mxu0 %v1413_v62 }
 0x1ab   :  { %332 = vmatpush.bf16.msra.mxu3 %v1388_v41 }
 0x1ae   :  { %210 = vxpose.xlu0.b32.cont [15/16] (narrow) %v191_v43, 8 }
 0x1af   :  { %333 = vmatpush.bf16.msra.mxu3 %v1388_v41 }
 0x1b3   :  { %334 = vmatpush.bf16.msra.mxu3 %v1388_v41 }
 0x1b6   :  { %211 = vxpose.xlu0.b32.end [16/16] (narrow) %v193_v44, 8 }
 0x1b7   :  { %335 = vmatpush.bf16.msra.mxu3 %v1388_v41 }
 0x1bb   :  { %336 = vmatpush.bf16.msra.mxu3 %v324_v45 }
 0x1bf   :  { %389 = vmatpush.bf16.msrb.mxu3 %v1397_v51 }
 0x1c3   :  { %390 = vmatpush.bf16.msrb.mxu3 %v1397_v51 }
 0x1c7   :  { %391 = vmatpush.bf16.msrb.mxu3 %v1397_v51 }
 0x1cb   :  { %392 = vmatpush.bf16.msrb.mxu3 %v1397_v51 }
 0x1cf   :  { %393 = vmatpush.bf16.msrb.mxu3 %v1397_v51 }
 0x1d3   :  { %394 = vmatpush.bf16.msrb.mxu3 %v1397_v51 }
 0x1d7   :  { %395 = vmatpush.bf16.msrb.mxu3 %v1397_v51 }
 0x1e2   :  { %v212_v54 = vpop.trf.xlu0 }
 0x1e3   :  { %v238_v57 = vperm.slane %v212_v54, 0  ;;  %v292_v58 = vperm.slane %v212_v54, 1  ;;  %v353_v59 = vperm.slane %v212_v54, 2  ;;  %v413_v7 = vperm.slane %v212_v54, 3 }
 0x1e5   :  { %v294_v60 = vadd.f32 %v292_v58, %v290_v50  ;;  %v293_v61 = vadd.f32 %v292_v58, %v286_v48  ;;  %v354_v3 = vadd.f32 %v353_v59, %v347_v46  ;;  %v239_v4 = vadd.f32 %v238_v57, %v231_v36 }
 0x1e6   :  { %v414_v14 = vadd.f32 %v413_v7, %v407_v39  ;;  %v240_v15 = vadd.f32 %v238_v57, %v1386_v38  ;;  %v415_v28 = vadd.f32 %v413_v7, %v411_v49  ;;  %v355_v29 = vadd.f32 %v353_v59, %v351_v47 }
 0x1e7   :  { %v296_v1 = vmul.f32 0.2, %v294_v60  ;;  %v295_v2 = vmul.f32 0.2, %v293_v61  ;;  %v356_v10 = vmul.f32 0.2, %v354_v3 }
 0x1e8   :  { %v241_v11 = vmul.f32 0.2, %v239_v4  ;;  %v416_v18 = vmul.f32 0.2, %v414_v14  ;;  %v242_v24 = vmul.f32 0.2, %v240_v15 }
 0x1e9   :  { %v298_v5 = vmax.f32 %v294_v60, %v296_v1  ;;  %v297_v6 = vmax.f32 %v293_v61, %v295_v2  ;;  %v358_v12 = vmax.f32 %v354_v3, %v356_v10  ;;  %v417_v32 = vmul.f32 0.2, %v415_v28 }
 0x1ea   :  { %v243_v13 = vmax.f32 %v239_v4, %v241_v11  ;;  %v418_v25 = vmax.f32 %v414_v14, %v416_v18  ;;  %v244_v27 = vmax.f32 %v240_v15, %v242_v24  ;;  %v357_v33 = vmul.f32 0.2, %v355_v29  ;;  %v1143_v15 = vld [vmem:[%s1597_s5 + $0x38] sm:$0xff]  ;;  %v1142_v24 = vld [vmem:[%s1597_s5 + $0x30] sm:$0xff] }
 0x1eb   :  { %v300_v8 = vadd.f32 %v298_v5, %v1415_v63  ;;  %v299_v9 = vadd.f32 %v297_v6, %v1417_v0  ;;  %v360_v16 = vadd.f32 %v358_v12, %v1417_v0  ;;  %v419_v34 = vmax.f32 %v415_v28, %v417_v32  ;;  %v1141_v28 = vld [vmem:[%s1597_s5 + $0x28] sm:$0xff] }
 0x1ec   :  { %v245_v17 = vadd.f32 %v243_v13, %v1417_v0  ;;  %v420_v30 = vadd.f32 %v418_v25, %v1417_v0  ;;  %v246_v31 = vadd.f32 %v244_v27, %v1415_v63  ;;  %v359_v35 = vmax.f32 %v355_v29, %v357_v33  ;;  %v1139_v33 = vld [vmem:[%s1597_s5 + $0x18] sm:$0xff] }
 0x1ed   :  { %303 = vmax.xlane.f32.xlu1 %v300_v8  ;;  %301 = vmax.xlane.f32.xlu2 %v299_v9  ;;  %v421_v36 = vadd.f32 %v419_v34, %v1415_v63 }
 0x1ee   :  { %v361_v37 = vadd.f32 %v359_v35, %v1415_v63 }
 0x1f5   :  { %362 = vmax.xlane.f32.xlu2 %v360_v16  ;;  %247 = vmax.xlane.f32.xlu1 %v245_v17 }
 0x1fd   :  { %422 = vmax.xlane.f32.xlu2 %v420_v30  ;;  %249 = vmax.xlane.f32.xlu1 %v246_v31 }
 0x205   :  { %424 = vmax.xlane.f32.xlu2 %v421_v36  ;;  %364 = vmax.xlane.f32.xlu1 %v361_v37 }
 0x21d   :  { %383 = vrot.lane.b32.xlu2 %v1360_v19, %s1273_s27  ;;  %1170 = vset.pattern.permute.xlu0 %v1270_v23 }
 0x21e   :  { %443 = vrot.lane.b32.xlu1 %v1360_v19, %s1274_s28 }
 0x260   :  { %v304_v38 = vpop.xlane.xlu1 %303  ;;  %v302_v39 = vpop.xlane.xlu2 %301 }
 0x261   :  { %v306_v40 = vsub.f32 %v300_v8, %v304_v38  ;;  %v305_v42 = vsub.f32 %v299_v9, %v302_v39  ;;  %v1136_v38 = vld [vmem:[%s1597_s5] sm:$0xff] }
 0x263   :  { %v309_v43 = vmul.f32 1.442695, %v306_v40  ;;  %v307_v44 = vmul.f32 1.442695, %v305_v42 }
 0x265   :  { %1177 = vpow2.f32 %v309_v43 }
 0x266   :  { %1179 = vpow2.f32 %v307_v44 }
 0x268   :  { %v363_v45 = vpop.xlane.xlu2 %362  ;;  %v248_v46 = vpop.xlane.xlu1 %247 }
 0x269   :  { %v366_v47 = vsub.f32 %v360_v16, %v363_v45  ;;  %v251_v54 = vsub.f32 %v245_v17, %v248_v46 }
 0x26b   :  { %v1178_v48 = vpop.eup %1177  ;;  %v368_v49 = vmul.f32 1.442695, %v366_v47  ;;  %v253_v56 = vmul.f32 1.442695, %v251_v54 }
 0x26c   :  { %v1180_v50 = vpop.eup %1179  ;;  %v312_v23 = vmul.f32 %v1178_v48, %v1403_v52 }
 0x26d   :  { %1181 = vpow2.f32 %v368_v49  ;;  %v311_v19 = vmul.f32 %v1180_v50, %v1408_v53 }
 0x26e   :  { %315 = vadd.xlane.f32.xlu2 %v312_v23  ;;  %1183 = vpow2.f32 %v253_v56 }
 0x26f   :  { %313 = vadd.xlane.f32.xlu0 %v311_v19  ;;  %v321_v55 = vpack.c.bf16 %v312_v23, %v311_v19 }
 0x270   :  { %v423_v57 = vpop.xlane.xlu2 %422  ;;  %v250_v58 = vpop.xlane.xlu1 %249 }
 0x271   :  { %337 = vmatmul.bf16.vlgmr.msra.gmra.mxu3 %v321_v55  ;;  %v426_v59 = vsub.f32 %v420_v30, %v423_v57  ;;  %v252_v60 = vsub.f32 %v246_v31, %v250_v58  ;;  %v1140_v31 = vld [vmem:[%s1597_s5 + $0x20] sm:$0xff] }
 0x273   :  { %v1182_v61 = vpop.eup %1181  ;;  %v428_v1 = vmul.f32 1.442695, %v426_v59  ;;  %v255_v2 = vmul.f32 1.442695, %v252_v60 }
 0x274   :  { %v372_v3 = vmul.f32 %v1182_v61, %v1408_v53  ;;  %v1184_v7 = vpop.eup %1183 }
 0x275   :  { %1185 = vpow2.f32 %v428_v1  ;;  %v257_v13 = vmul.f32 %v1184_v7, %v1408_v53 }
 0x276   :  { %1187 = vpow2.f32 %v255_v2  ;;  %374 = vadd.xlane.f32.xlu1 %v372_v3 }
 0x278   :  { %v425_v4 = vpop.xlane.xlu2 %424  ;;  %v365_v5 = vpop.xlane.xlu1 %364 }
 0x279   :  { %v367_v6 = vsub.f32 %v361_v37, %v365_v5  ;;  %v427_v11 = vsub.f32 %v421_v36, %v425_v4  ;;  %v1138_v36 = vld [vmem:[%s1597_s5 + $0x10] sm:$0xff]  ;;  %v1137_v37 = vld [vmem:[%s1597_s5 + $0x8] sm:$0xff] }
 0x27b   :  { %v1186_v8 = vpop.eup %1185  ;;  %v370_v9 = vmul.f32 1.442695, %v367_v6  ;;  %v430_v17 = vmul.f32 1.442695, %v427_v11 }
 0x27c   :  { %v1188_v10 = vpop.eup %1187  ;;  %v432_v12 = vmul.f32 %v1186_v8, %v1408_v53 }
 0x27d   :  { %v258_v14 = vmul.f32 %v1188_v10, %v1403_v52  ;;  %1189 = vpow2.f32 %v370_v9 }
 0x27e   :  { %434 = vadd.xlane.f32.xlu1 %v432_v12  ;;  %1191 = vpow2.f32 %v430_v17  ;;  %v1149_v17 = vld [vmem:[%s1598_s6 + $0x28] sm:$0xff] }
 0x27f   :  { %v267_v16 = vpack.c.bf16 %v258_v14, %v257_v13 }
 0x280   :  { %v384_v18 = vpop.permute.xlu2 %383 }
 0x281   :  { %276 = vmatmul.bf16.vlgmr.msrb.gmra.mxu0 %v267_v16  ;;  %396 = vmatpush.bf16.msrb.mxu3 %v384_v18 }
 0x283   :  { %v1190_v25 = vpop.eup %1189 }
 0x284   :  { %v373_v27 = vmul.f32 %v1190_v25, %v1403_v52  ;;  %v1192_v30 = vpop.eup %1191 }
 0x285   :  { %569 = vmatpush.bf16.msra.mxu3 %v1143_v15  ;;  %v433_v32 = vmul.f32 %v1192_v30, %v1403_v52  ;;  %v1150_v15 = vld [vmem:[%s1598_s6 + $0x30] sm:$0xff] }
 0x286   :  { %259 = vadd.xlane.f32.xlu1 %v257_v13  ;;  %376 = vadd.xlane.f32.xlu2 %v373_v27  ;;  %v382_v29 = vpack.c.bf16 %v373_v27, %v372_v3  ;;  %v1148_v27 = vld [vmem:[%s1598_s6 + $0x20] sm:$0xff] }
 0x287   :  { %v442_v35 = vpack.c.bf16 %v433_v32, %v432_v12 }
 0x288   :  { %397 = vmatmul.bf16.vlgmr.msrb.gmra.mxu3 %v382_v29 }
 0x289   :  { %570 = vmatpush.bf16.msra.mxu3 %v1142_v24 }
 0x28d   :  { %571 = vmatpush.bf16.msra.mxu3 %v1141_v28 }
 0x28e   :  { %436 = vadd.xlane.f32.xlu2 %v433_v32 }
 0x290   :  { %v444_v34 = vpop.permute.xlu1 %443 }
 0x291   :  { %572 = vmatpush.bf16.msra.mxu3 %v1140_v31  ;;  %456 = vmatpush.bf16.msra.mxu0 %v444_v34 }
 0x294   :  { %457 = vmatmul.bf16.vlgmr.msra.gmra.mxu0 %v442_v35  ;;  %v1175_v35 = vld [vmem:[%s1596_s4] ss:$0 sm:$0xff] }
 0x295   :  { %573 = vmatpush.bf16.msra.mxu3 %v1139_v33 }
 0x296   :  { %261 = vadd.xlane.f32.xlu2 %v258_v14  ;;  %v1151_v14 = vld [vmem:[%s1598_s6 + $0x38] sm:$0xff] }
 0x297   :  { %656 = vmatpush.bf16.msra.mxu2 %v1151_v14 }
 0x299   :  { %574 = vmatpush.bf16.msra.mxu3 %v1138_v36 }
 0x29b   :  { %657 = vmatpush.bf16.msra.mxu2 %v1150_v15 }
 0x29d   :  { %575 = vmatpush.bf16.msra.mxu3 %v1137_v37 }
 0x29f   :  { %658 = vmatpush.bf16.msra.mxu2 %v1149_v17 }
 0x2a1   :  { %576 = vmatpush.bf16.msra.mxu3 %v1136_v38 }
 0x2a3   :  { %659 = vmatpush.bf16.msra.mxu2 %v1148_v27 }
 0x2a5   :  { %891 = vmatpush.bf16.msrb.mxu3 %v1397_v51 }
 0x2a9   :  { %892 = vmatpush.bf16.msrb.mxu3 %v1397_v51 }
 0x2ad   :  { %893 = vmatpush.bf16.msrb.mxu3 %v1397_v51 }
 0x2b1   :  { %894 = vmatpush.bf16.msrb.mxu3 %v1397_v51 }
 0x2b5   :  { %895 = vmatpush.bf16.msrb.mxu3 %v1397_v51 }
 0x2b9   :  { %896 = vmatpush.bf16.msrb.mxu3 %v1397_v51 }
 0x2bd   :  { %897 = vmatpush.bf16.msrb.mxu3 %v1397_v51 }
 0x2e1   :  { %v316_v42 = vpop.xlane.xlu2 %315 }
 0x2e2   :  { %v314_v39 = vpop.xlane.xlu0 %313  ;;  %v318_v43 = vmax.f32 %v316_v42, 1e-16 }
 0x2e3   :  { %v317_v40 = vmax.f32 %v314_v39, 1e-16 }
 0x2e5   :  { %1193 = vrcp.f32 %v317_v40 }
 0x2e6   :  { %1195 = vrcp.f32 %v318_v43 }
 0x2e9   :  { %v375_v48 = vpop.xlane.xlu1 %374 }
 0x2ea   :  { %v378_v23 = vmax.f32 %v375_v48, 1e-16  ;;  %v1147_v48 = vld [vmem:[%s1598_s6 + $0x18] sm:$0xff] }
 0x2eb   :  { %v1194_v44 = vpop.eup %1193  ;;  %660 = vmatpush.bf16.msra.mxu2 %v1147_v48 }
 0x2ec   :  { %v1196_v47 = vpop.eup %1195  ;;  %1197 = vrcp.f32 %v378_v23 }
 0x2f1   :  { %v435_v19 = vpop.xlane.xlu1 %434 }
 0x2f2   :  { %v438_v55 = vmax.f32 %v435_v19, 1e-16  ;;  %v1198_v58 = vpop.eup %1197 }
 0x2f4   :  { %v338_v45 = vpop.f32.mrf.mxu3  ;;  %1199 = vrcp.f32 %v438_v55 }
 0x2f5   :  { %v343_v46 = vmul.f32 %v1194_v44, %v338_v45 }
 0x2f7   :  { %467 = vrot.lane.b32.xlu1 %v343_v46, %s1274_s28 }
 0x2f9   :  { %v377_v51 = vpop.xlane.xlu2 %376  ;;  %v260_v12 = vpop.xlane.xlu1 %259 }
 0x2fa   :  { %v379_v57 = vmax.f32 %v377_v51, 1e-16  ;;  %v1200_v3 = vpop.eup %1199  ;;  %v263_v18 = vmax.f32 %v260_v12, 1e-16 }
 0x2fc   :  { %v340_v49 = vpop.f32.mrf.mxu3  ;;  %1201 = vrcp.f32 %v379_v57 }
 0x2fd   :  { %v344_v50 = vmul.f32 %v1196_v47, %v340_v49  ;;  %v1146_v49 = vld [vmem:[%s1598_s6 + $0x10] sm:$0xff] }
 0x2fe   :  { %v277_v54 = vpop.f32.mrf.mxu0  ;;  %661 = vmatpush.bf16.msra.mxu2 %v1146_v49 }
 0x2ff   :  { %469 = vrot.lane.b32.xlu2 %v344_v50, %s1274_s28  ;;  %v1145_v50 = vld [vmem:[%s1598_s6 + $0x8] sm:$0xff] }
 0x301   :  { %v437_v61 = vpop.xlane.xlu2 %436 }
 0x302   :  { %v439_v2 = vmax.f32 %v437_v61, 1e-16  ;;  %v1202_v4 = vpop.eup %1201  ;;  %662 = vmatpush.bf16.msra.mxu2 %v1145_v50 }
 0x304   :  { %1203 = vrcp.f32 %v439_v2 }
 0x306   :  { %v279_v56 = vpop.f32.mrf.mxu0 }
 0x309   :  { %v262_v11 = vpop.xlane.xlu2 %261 }
 0x30a   :  { %v1204_v9 = vpop.eup %1203  ;;  %v264_v16 = vmax.f32 %v262_v11, 1e-16 }
 0x30b   :  { %v398_v59 = vpop.f32.mrf.mxu3 }
 0x30c   :  { %v403_v60 = vmul.f32 %v1198_v58, %v398_v59  ;;  %1205 = vrcp.f32 %v264_v16 }
 0x30d   :  { %1207 = vrcp.f32 %v263_v18 }
 0x30e   :  { %475 = vrot.lane.b32.xlu1 %v403_v60, %s1273_s27 }
 0x311   :  { %v458_v1 = vpop.f32.mrf.mxu0 }
 0x312   :  { %v463_v6 = vmul.f32 %v1200_v3, %v458_v1  ;;  %v1206_v28 = vpop.eup %1205 }
 0x313   :  { %v400_v5 = vpop.f32.mrf.mxu3  ;;  %v283_v30 = vmul.f32 %v1206_v28, %v279_v56  ;;  %v1208_v31 = vpop.eup %1207 }
 0x314   :  { %v404_v7 = vmul.f32 %v1202_v4, %v400_v5  ;;  %v282_v36 = vmul.f32 %v1208_v31, %v277_v54  ;;  %v1144_v54 = vld [vmem:[%s1598_s6] sm:$0xff] }
 0x315   :  { %663 = vmatpush.bf16.msra.mxu2 %v1144_v54 }
 0x316   :  { %477 = vrot.lane.b32.xlu2 %v404_v7, %s1273_s27  ;;  %483 = vrot.lane.b32.xlu1 %v463_v6, %s1272_s3 }
 0x319   :  { %v460_v8 = vpop.f32.mrf.mxu0 }
 0x31a   :  { %v464_v10 = vmul.f32 %v1204_v9, %v460_v8 }
 0x31e   :  { %485 = vrot.lane.b32.xlu2 %v464_v10, %s1272_s3 }
 0x359   :  { %v470_v13 = vpop.permute.xlu2 %469 }
 0x35a   :  { %v490_v33 = vsel %vm56_vm0, %v283_v30, %v470_v13 }
 0x369   :  { %v468_v24 = vpop.permute.xlu1 %467 }
 0x36a   :  { %v489_v38 = vsel %vm56_vm0, %v282_v36, %v468_v24 }
 0x370   :  { %v478_v25 = vpop.permute.xlu2 %477 }
 0x371   :  { %v493_v34 = vsel %vm491_vm1, %v490_v33, %v478_v25 }
 0x378   :  { %v486_v32 = vpop.permute.xlu2 %485 }
 0x379   :  { %v496_v37 = vsel %vm494_vm2, %v493_v34, %v486_v32 }
 0x37a   :  { %v501_v39 = vadd.f32 %v1175_v35, %v496_v37 }
 0x37c   :  { %v503_v45 = vmax.f32 %v501_v39, 0.0 }
 0x380   :  { %v476_v29 = vpop.permute.xlu1 %475 }
 0x381   :  { %v492_v40 = vsel %vm491_vm1, %v489_v38, %v476_v29 }
 0x388   :  { %v484_v42 = vpop.permute.xlu1 %483 }
 0x389   :  { %v495_v43 = vsel %vm494_vm2, %v492_v40, %v484_v42 }
 0x38a   :  { %v500_v44 = vadd.f32 %v1175_v35, %v495_v43 }
 0x38c   :  { %v502_v46 = vmax.f32 %v500_v44, 0.0 }
 0x38e   :  { %v504_v47 = vpack.c.bf16 %v503_v45, %v502_v46 }
 0x390   :  { %577 = vmatmul.bf16.vlgmr.msra.gmra.mxu3 %v504_v47 }
 0x413   :  { %v578_v23 = vpop.f32.mrf.mxu3 }
 0x414   :  { %v583_v51 = vpack.c.bf16 %v578_v23, %v578_v23 }
 0x416   :  { %v604_v56 = vunpack.c.l.b16 %v583_v51 }
 0x41b   :  { %v580_v19 = vpop.f32.mrf.mxu3 }
 0x41c   :  { %v584_v55 = vpack.c.bf16 %v580_v19, %v580_v19 }
 0x41e   :  { %v605_v57 = vunpack.c.l.b16 %v584_v55 }
 0x420   :  { %v1523_v58 = vpack.c.b16 %v605_v57, %v604_v56 }
 0x422   :  { %664 = vmatmul.bf16.vlgmr.msra.gmra.mxu2 %v1523_v58  ;;  %784 = vmatpush.bf16.msrb.mxu0 %v1523_v58 }
 0x426   :  { %834 = vmatpush.bf16.msra.mxu0 %v1388_v41 }
 0x42a   :  { %835 = vmatpush.bf16.msra.mxu0 %v1388_v41 }
 0x42e   :  { %836 = vmatpush.bf16.msra.mxu0 %v1388_v41 }
 0x432   :  { %837 = vmatpush.bf16.msra.mxu0 %v1388_v41  ;;  %669 = vmatmul.bf16.gmra.mxu2 %v1267_v20 }
 0x436   :  { %838 = vmatpush.bf16.msra.mxu0 %v1388_v41 }
 0x43a   :  { %839 = vmatpush.bf16.msra.mxu0 %v1388_v41 }
 0x43e   :  { %840 = vmatpush.bf16.msra.mxu0 %v1388_v41 }
 0x442   :  { %674 = vmatmul.bf16.gmra.mxu2 %v1267_v20 }
 0x452   :  { %679 = vmatmul.bf16.gmra.mxu2 %v1267_v20 }
 0x462   :  { %684 = vmatmul.bf16.gmra.mxu2 %v1267_v20 }
 0x472   :  { %689 = vmatmul.bf16.gmra.mxu2 %v1267_v20 }
 0x482   :  { %694 = vmatmul.bf16.gmra.mxu2 %v1267_v20 }
 0x492   :  { %699 = vmatmul.bf16.gmra.mxu2 %v1267_v20 }
 0x4a5   :  { %v665_v59 = vpop.f32.mrf.mxu2 }
 0x4a6   :  { %794 = vperm.xlu2 %1169, %v665_v59   ;;  %739 = vperm.xlu1 %1168, %v665_v59  }
 0x4ad   :  { %v667_v60 = vpop.f32.mrf.mxu2 }
 0x4ae   :  { %1171 = vset.pattern.permute.xlu1 %v1269_v22  ;;  %744 = vperm.xlu0 %1170, %v667_v60  }
 0x4af   :  { %798 = vperm.xlu1 %1171, %v667_v60  }
 0x4b5   :  { %v670_v41 = vpop.f32.mrf.mxu2 }
 0x4b6   :  { %831 = vrot.lane.b32.xlu0 %v1523_v58, %s1272_s3 }
 0x4b7   :  { %1172 = vset.pattern.permute.xlu1 %v1268_v21  ;;  %1174 = vset.pattern.permute.xlu0 %v1271_v26 }
 0x4b8   :  { %851 = vperm.xlu1 %1172, %v665_v59  }
 0x4bd   :  { %v672_v20 = vpop.f32.mrf.mxu2 }
 0x4c0   :  { %855 = vperm.xlu1 %1172, %v667_v60  }
 0x4c5   :  { %v675_v22 = vpop.f32.mrf.mxu2 }
 0x4c8   :  { %1173 = vset.pattern.permute.xlu1 %v1271_v26 }
 0x4c9   :  { %908 = vperm.xlu1 %1173, %v665_v59  }
 0x4cc   :  { %705 = vxpose.xlu2.b32.start [1/16] (narrow) %v665_v59, 8 }
 0x4cd   :  { %v677_v61 = vpop.f32.mrf.mxu2 }
 0x4d1   :  { %912 = vperm.xlu1 %1173, %v667_v60  }
 0x4d4   :  { %706 = vxpose.xlu2.b32.cont [2/16] (narrow) %v667_v60, 8 }
 0x4d5   :  { %v680_v1 = vpop.f32.mrf.mxu2 }
 0x4dc   :  { %707 = vxpose.xlu2.b32.cont [3/16] (narrow) %v670_v41, 8 }
 0x4dd   :  { %v682_v2 = vpop.f32.mrf.mxu2 }
 0x4e4   :  { %708 = vxpose.xlu2.b32.cont [4/16] (narrow) %v672_v20, 8 }
 0x4e5   :  { %v685_v21 = vpop.f32.mrf.mxu2 }
 0x4ec   :  { %709 = vxpose.xlu2.b32.cont [5/16] (narrow) %v675_v22, 8 }
 0x4ed   :  { %v687_v3 = vpop.f32.mrf.mxu2 }
 0x4f4   :  { %710 = vxpose.xlu2.b32.cont [6/16] (narrow) %v677_v61, 8 }
 0x4f5   :  { %v690_v4 = vpop.f32.mrf.mxu2 }
 0x4fc   :  { %711 = vxpose.xlu2.b32.cont [7/16] (narrow) %v680_v1, 8 }
 0x4fd   :  { %v692_v26 = vpop.f32.mrf.mxu2 }
 0x500   :  { %v795_v13 = vpop.permute.xlu2 %794 }
 0x504   :  { %712 = vxpose.xlu2.b32.cont [8/16] (narrow) %v682_v2, 8 }
 0x505   :  { %v695_v6 = vpop.f32.mrf.mxu2 }
 0x50c   :  { %713 = vxpose.xlu2.b32.cont [9/16] (narrow) %v685_v21, 8 }
 0x50d   :  { %v697_v8 = vpop.f32.mrf.mxu2 }
 0x514   :  { %714 = vxpose.xlu2.b32.cont [10/16] (narrow) %v687_v3, 8 }
 0x515   :  { %v700_v9 = vpop.f32.mrf.mxu2 }
 0x518   :  { %v740_v11 = vpop.permute.xlu1 %739 }
 0x51c   :  { %715 = vxpose.xlu2.b32.cont [11/16] (narrow) %v690_v4, 8 }
 0x51d   :  { %v702_v10 = vpop.f32.mrf.mxu2 }
 0x520   :  { %v745_v5 = vpop.permute.xlu0 %744 }
 0x521   :  { %v799_v12 = vpop.permute.xlu1 %798 }
 0x524   :  { %716 = vxpose.xlu2.b32.cont [12/16] (narrow) %v692_v26, 8 }
 0x528   :  { %v832_v7 = vpop.permute.xlu0 %831 }
 0x529   :  { %841 = vmatpush.bf16.msra.mxu0 %v832_v7 }
 0x52a   :  { %v852_v14 = vpop.permute.xlu1 %851 }
 0x52c   :  { %717 = vxpose.xlu2.b32.cont [13/16] (narrow) %v695_v6, 8 }
 0x532   :  { %v856_v32 = vpop.permute.xlu1 %855 }
 0x534   :  { %718 = vxpose.xlu2.b32.cont [14/16] (narrow) %v697_v8, 8 }
 0x53b   :  { %v909_v48 = vpop.permute.xlu1 %908 }
 0x53c   :  { %719 = vxpose.xlu2.b32.cont [15/16] (narrow) %v700_v9, 8 }
 0x543   :  { %v913_v55 = vpop.permute.xlu1 %912 }
 0x544   :  { %720 = vxpose.xlu2.b32.end [16/16] (narrow) %v702_v10, 8 }
 0x565   :  { %v721_v15 = vpop.trf.xlu2 }
 0x566   :  { %v747_v16 = vperm.slane %v721_v15, 0  ;;  %v801_v17 = vperm.slane %v721_v15, 1  ;;  %v858_v33 = vperm.slane %v721_v15, 2  ;;  %v915_v43 = vperm.slane %v721_v15, 3 }
 0x568   :  { %v749_v18 = vadd.f32 %v747_v16, %v745_v5  ;;  %v748_v24 = vadd.f32 %v747_v16, %v740_v11  ;;  %v803_v28 = vadd.f32 %v801_v17, %v799_v12  ;;  %v802_v29 = vadd.f32 %v801_v17, %v795_v13 }
 0x569   :  { %v860_v40 = vadd.f32 %v858_v33, %v856_v32  ;;  %v859_v42 = vadd.f32 %v858_v33, %v852_v14  ;;  %v916_v54 = vadd.f32 %v915_v43, %v909_v48  ;;  %v917_v57 = vadd.f32 %v915_v43, %v913_v55 }
 0x56a   :  { %v751_v25 = vmul.f32 0.2, %v749_v18  ;;  %v750_v27 = vmul.f32 0.2, %v748_v24  ;;  %v805_v36 = vmul.f32 0.2, %v803_v28 }
 0x56b   :  { %v804_v37 = vmul.f32 0.2, %v802_v29  ;;  %v862_v46 = vmul.f32 0.2, %v860_v40  ;;  %v861_v47 = vmul.f32 0.2, %v859_v42 }
 0x56c   :  { %v753_v30 = vmax.f32 %v749_v18, %v751_v25  ;;  %v752_v31 = vmax.f32 %v748_v24, %v750_v27  ;;  %v807_v38 = vmax.f32 %v803_v28, %v805_v36  ;;  %v918_v19 = vmul.f32 0.2, %v916_v54 }
 0x56d   :  { %v806_v39 = vmax.f32 %v802_v29, %v804_v37  ;;  %v864_v49 = vmax.f32 %v860_v40, %v862_v46  ;;  %v863_v50 = vmax.f32 %v859_v42, %v861_v47  ;;  %v919_v60 = vmul.f32 0.2, %v917_v57 }
 0x56e   :  { %v755_v34 = vadd.f32 %v753_v30, %v1415_v63  ;;  %v754_v35 = vadd.f32 %v752_v31, %v1417_v0  ;;  %v809_v44 = vadd.f32 %v807_v38, %v1415_v63  ;;  %v920_v56 = vmax.f32 %v916_v54, %v918_v19 }
 0x56f   :  { %v808_v45 = vadd.f32 %v806_v39, %v1417_v0  ;;  %v866_v23 = vadd.f32 %v864_v49, %v1415_v63  ;;  %v865_v51 = vadd.f32 %v863_v50, %v1417_v0  ;;  %v921_v41 = vmax.f32 %v917_v57, %v919_v60 }
 0x570   :  { %758 = vmax.xlane.f32.xlu1 %v755_v34  ;;  %756 = vmax.xlane.f32.xlu0 %v754_v35  ;;  %v922_v59 = vadd.f32 %v920_v56, %v1417_v0 }
 0x571   :  { %v923_v20 = vadd.f32 %v921_v41, %v1415_v63 }
 0x578   :  { %812 = vmax.xlane.f32.xlu1 %v809_v44  ;;  %810 = vmax.xlane.f32.xlu0 %v808_v45 }
 0x580   :  { %869 = vmax.xlane.f32.xlu1 %v866_v23  ;;  %867 = vmax.xlane.f32.xlu0 %v865_v51 }
 0x588   :  { %924 = vmax.xlane.f32.xlu1 %v922_v59 }
 0x590   :  { %926 = vmax.xlane.f32.xlu1 %v923_v20 }
 0x594   :  { %888 = vrot.lane.b32.xlu0 %v1523_v58, %s1273_s27 }
 0x5a9   :  { %945 = vrot.lane.b32.xlu1 %v1523_v58, %s1274_s28 }
 0x5e3   :  { %v759_v22 = vpop.xlane.xlu1 %758  ;;  %v757_v61 = vpop.xlane.xlu0 %756 }
 0x5e4   :  { %v761_v1 = vsub.f32 %v755_v34, %v759_v22  ;;  %v760_v2 = vsub.f32 %v754_v35, %v757_v61 }
 0x5e6   :  { %v764_v21 = vmul.f32 1.442695, %v761_v1  ;;  %v762_v3 = vmul.f32 1.442695, %v760_v2 }
 0x5e8   :  { %1209 = vpow2.f32 %v764_v21 }
 0x5e9   :  { %1211 = vpow2.f32 %v762_v3 }
 0x5eb   :  { %v813_v0 = vpop.xlane.xlu1 %812  ;;  %v811_v4 = vpop.xlane.xlu0 %810 }
 0x5ec   :  { %v815_v26 = vsub.f32 %v809_v44, %v813_v0  ;;  %v814_v5 = vsub.f32 %v808_v45, %v811_v4 }
 0x5ee   :  { %v1210_v63 = vpop.eup %1209  ;;  %v818_v6 = vmul.f32 1.442695, %v815_v26  ;;  %v816_v7 = vmul.f32 1.442695, %v814_v5 }
 0x5ef   :  { %v1212_v8 = vpop.eup %1211  ;;  %v767_v9 = vmul.f32 %v1210_v63, %v1403_v52 }
 0x5f0   :  { %v766_v58 = vmul.f32 %v1212_v8, %v1408_v53  ;;  %1213 = vpow2.f32 %v818_v6 }
 0x5f1   :  { %1215 = vpow2.f32 %v816_v7 }
 0x5f2   :  { %v776_v10 = vpack.c.bf16 %v767_v9, %v766_v58 }
 0x5f3   :  { %v870_v11 = vpop.xlane.xlu1 %869  ;;  %v868_v12 = vpop.xlane.xlu0 %867 }
 0x5f4   :  { %v872_v13 = vsub.f32 %v866_v23, %v870_v11  ;;  %785 = vmatmul.bf16.vlgmr.msrb.gmra.mxu0 %v776_v10  ;;  %v871_v14 = vsub.f32 %v865_v51, %v868_v12 }
 0x5f5   :  { %948 = vmatpush.bf16.msrb.mxu0 %v1413_v62 }
 0x5f6   :  { %v1214_v15 = vpop.eup %1213  ;;  %v875_v16 = vmul.f32 1.442695, %v872_v13  ;;  %v873_v17 = vmul.f32 1.442695, %v871_v14 }
 0x5f7   :  { %v1216_v18 = vpop.eup %1215  ;;  %v821_v24 = vmul.f32 %v1214_v15, %v1403_v52 }
 0x5f8   :  { %1217 = vpow2.f32 %v875_v16  ;;  %v820_v25 = vmul.f32 %v1216_v18, %v1408_v53 }
 0x5f9   :  { %1219 = vpow2.f32 %v873_v17  ;;  %949 = vmatpush.bf16.msrb.mxu0 %v1413_v62  ;;  %824 = vadd.xlane.f32.xlu1 %v821_v24 }
 0x5fa   :  { %822 = vadd.xlane.f32.xlu0 %v820_v25  ;;  %v830_v34 = vpack.c.bf16 %v821_v24, %v820_v25  ;;  %v1176_v24 = vld [vmem:[%s1599_s7] ss:$0 sm:$0xff]  ;;  %s1276_s7 = smov 128  }
 0x5fb   :  { %v925_v27 = vpop.xlane.xlu1 %924 }
 0x5fc   :  { %v928_v28 = vsub.f32 %v922_v59, %v925_v27 }
 0x5fd   :  { %950 = vmatpush.bf16.msrb.mxu0 %v1413_v62 }
 0x5fe   :  { %v1218_v29 = vpop.eup %1217  ;;  %v930_v30 = vmul.f32 1.442695, %v928_v28 }
 0x5ff   :  { %v1220_v31 = vpop.eup %1219  ;;  %v878_v32 = vmul.f32 %v1218_v29, %v1403_v52 }
 0x600   :  { %1221 = vpow2.f32 %v930_v30  ;;  %v877_v33 = vmul.f32 %v1220_v31, %v1408_v53 }
 0x601   :  { %951 = vmatpush.bf16.msrb.mxu0 %v1413_v62  ;;  %768 = vadd.xlane.f32.xlu1 %v766_v58 }
 0x602   :  { %881 = vadd.xlane.f32.xlu0 %v878_v32  ;;  %879 = vadd.xlane.f32.xlu2 %v877_v33  ;;  %v887_v42 = vpack.c.bf16 %v878_v32, %v877_v33 }
 0x603   :  { %v927_v35 = vpop.xlane.xlu1 %926 }
 0x604   :  { %v929_v36 = vsub.f32 %v923_v20, %v927_v35  ;;  %842 = vmatmul.bf16.vlgmr.msra.gmra.mxu0 %v830_v34 }
 0x605   :  { %952 = vmatpush.bf16.msrb.mxu0 %v1413_v62 }
 0x606   :  { %v1222_v37 = vpop.eup %1221  ;;  %v932_v38 = vmul.f32 1.442695, %v929_v36  ;;  %v889_v39 = vpop.permute.xlu0 %888 }
 0x607   :  { %898 = vmatpush.bf16.msrb.mxu3 %v889_v39  ;;  %v934_v40 = vmul.f32 %v1222_v37, %v1408_v53 }
 0x608   :  { %1223 = vpow2.f32 %v932_v38 }
 0x609   :  { %953 = vmatpush.bf16.msrb.mxu0 %v1413_v62 }
 0x60a   :  { %936 = vadd.xlane.f32.xlu0 %v934_v40  ;;  %899 = vmatmul.bf16.vlgmr.msrb.gmra.mxu3 %v887_v42 }
 0x60d   :  { %954 = vmatpush.bf16.msrb.mxu0 %v1413_v62 }
 0x60e   :  { %v1224_v43 = vpop.eup %1223 }
 0x60f   :  { %v935_v44 = vmul.f32 %v1224_v43, %v1403_v52 }
 0x611   :  { %v944_v46 = vpack.c.bf16 %v935_v44, %v934_v40 }
 0x612   :  { %938 = vadd.xlane.f32.xlu0 %v935_v44 }
 0x61a   :  { %770 = vadd.xlane.f32.xlu0 %v767_v9 }
 0x61b   :  { %v946_v45 = vpop.permute.xlu1 %945 }
 0x61c   :  { %955 = vmatpush.bf16.msrb.mxu0 %v946_v45 }
 0x61f   :  { %956 = vmatmul.bf16.vlgmr.msrb.gmra.mxu0 %v944_v46 }
 0x66c   :  { %v825_v23 = vpop.xlane.xlu1 %824 }
 0x66d   :  { %v823_v48 = vpop.xlane.xlu0 %822  ;;  %v827_v19 = vmax.f32 %v825_v23, 1e-16 }
 0x66e   :  { %v826_v60 = vmax.f32 %v823_v48, 1e-16 }
 0x671   :  { %v786_v47 = vpop.f32.mrf.mxu0 }
 0x674   :  { %v769_v58 = vpop.xlane.xlu1 %768 }
 0x675   :  { %v880_v49 = vpop.xlane.xlu2 %879  ;;  %v882_v54 = vpop.xlane.xlu0 %881  ;;  %v772_v11 = vmax.f32 %v769_v58, 1e-16 }
 0x676   :  { %v883_v50 = vmax.f32 %v880_v49, 1e-16  ;;  %v884_v62 = vmax.f32 %v882_v54, 1e-16 }
 0x678   :  { %1225 = vrcp.f32 %v883_v50 }
 0x679   :  { %v788_v53 = vpop.f32.mrf.mxu0  ;;  %1227 = vrcp.f32 %v827_v19 }
 0x67a   :  { %1229 = vrcp.f32 %v884_v62 }
 0x67d   :  { %v937_v56 = vpop.xlane.xlu0 %936 }
 0x67e   :  { %v1226_v55 = vpop.eup %1225  ;;  %v940_v59 = vmax.f32 %v937_v56, 1e-16 }
 0x67f   :  { %v1228_v20 = vpop.eup %1227 }
 0x680   :  { %v1230_v22 = vpop.eup %1229  ;;  %1231 = vrcp.f32 %v940_v59 }
 0x681   :  { %v843_v51 = vpop.f32.mrf.mxu0  ;;  %1233 = vrcp.f32 %v826_v60 }
 0x685   :  { %v939_v21 = vpop.xlane.xlu0 %938 }
 0x686   :  { %v941_v3 = vmax.f32 %v939_v21, 1e-16  ;;  %v1232_v0 = vpop.eup %1231 }
 0x687   :  { %v1234_v26 = vpop.eup %1233 }
 0x688   :  { %v848_v63 = vmul.f32 %v1234_v26, %v843_v51  ;;  %1235 = vrcp.f32 %v941_v3 }
 0x689   :  { %v845_v41 = vpop.f32.mrf.mxu0  ;;  %1237 = vrcp.f32 %v772_v11 }
 0x68a   :  { %v849_v1 = vmul.f32 %v1228_v20, %v845_v41 }
 0x68d   :  { %v900_v52 = vpop.f32.mrf.mxu3  ;;  %v771_v9 = vpop.xlane.xlu0 %770 }
 0x68e   :  { %v905_v57 = vmul.f32 %v1226_v55, %v900_v52  ;;  %v1236_v6 = vpop.eup %1235  ;;  %v773_v12 = vmax.f32 %v771_v9, 1e-16 }
 0x68f   :  { %v1238_v15 = vpop.eup %1237 }
 0x690   :  { %974 = vrot.lane.b32.xlu0 %v905_v57, %s1273_s27  ;;  %1239 = vrcp.f32 %v773_v12  ;;  %v791_v16 = vmul.f32 %v1238_v15, %v786_v47 }
 0x695   :  { %v902_v61 = vpop.f32.mrf.mxu3 }
 0x696   :  { %v906_v2 = vmul.f32 %v1230_v22, %v902_v61  ;;  %v1240_v17 = vpop.eup %1239 }
 0x697   :  { %v792_v29 = vmul.f32 %v1240_v17, %v788_v53 }
 0x698   :  { %968 = vrot.lane.b32.xlu0 %v849_v1, %s1274_s28  ;;  %976 = vrot.lane.b32.xlu1 %v906_v2, %s1273_s27 }
 0x69c   :  { %v957_v4 = vpop.f32.mrf.mxu0 }
 0x69d   :  { %v962_v5 = vmul.f32 %v1232_v0, %v957_v4 }
 0x6a0   :  { %966 = vrot.lane.b32.xlu1 %v848_v63, %s1274_s28  ;;  %982 = vrot.lane.b32.xlu0 %v962_v5, %s1272_s3 }
 0x6a4   :  { %v959_v7 = vpop.f32.mrf.mxu0 }
 0x6a5   :  { %v963_v8 = vmul.f32 %v1236_v6, %v959_v7 }
 0x6a8   :  { %984 = vrot.lane.b32.xlu1 %v963_v8, %s1272_s3  ;;  %s1275_s3 = smov [#allocation2]  }
 0x6a9   :  { %s1005_s28 = sshll.u32 %s1275_s3, 4  ;;  %s1006_s28 = int_to_ptr.vmem [resolvable:$true] %s1005_s28 }
 0x702   :  { %v975_v10 = vpop.permute.xlu0 %974 }
 0x70a   :  { %v977_v13 = vpop.permute.xlu1 %976  ;;  %v969_v14 = vpop.permute.xlu0 %968 }
 0x70b   :  { %v989_v32 = vsel %vm56_vm0, %v792_v29, %v969_v14 }
 0x70c   :  { %v991_v34 = vsel %vm491_vm1, %v989_v32, %v977_v13 }
 0x712   :  { %v967_v18 = vpop.permute.xlu1 %966  ;;  %v983_v28 = vpop.permute.xlu0 %982 }
 0x713   :  { %v988_v25 = vsel %vm56_vm0, %v791_v16, %v967_v18 }
 0x714   :  { %v990_v27 = vsel %vm491_vm1, %v988_v25, %v975_v10 }
 0x715   :  { %v992_v30 = vsel %vm494_vm2, %v990_v27, %v983_v28 }
 0x716   :  { %v997_v31 = vadd.f32 %v1176_v24, %v992_v30 }
 0x718   :  { %999 = vst [vmem:[#allocation2] sm:$0xff] %v997_v31 }
 0x71a   :  { %v985_v33 = vpop.permute.xlu1 %984 }
 0x71b   :  { %v993_v35 = vsel %vm494_vm2, %v991_v34, %v985_v33 }
 0x71c   :  { %v998_v36 = vadd.f32 %v1176_v24, %v993_v35 }
 0x71e   :  { %1000 = vst [vmem:[#allocation2 + $0x8] sm:$0xff] %v998_v36 }
 0x71f   :  { %1013 = dma.vmem_to_hbm [thread:$0]  %s1006_s28, 256, %s1008_s0, [#allocation3], %s1276_s7, %s1276_s7, %s1277_s20  }
 0x720   :  { %1265 = dma.done.wait [#allocation3], 256  }
 0x721   :  { %1266 = vsyncadd [#allocation3], 4294967040 }
 0x722   :  { %1018 = vsyncpa [#allocation3], 1 }

</bundles_post_ra>
